<compile_context>
chip_gen: v5e
topology: v5e:2x2
jax: 0.10.0
libtpu: 0.0.40
codegen_flags: <defaults>
</compile_context>

<pallas_src>
import jax
import jax.numpy as jnp
from jax.experimental import pallas as pl
from jax.experimental.pallas import tpu as pltpu


# ----------------------------------------------------------------------------- kernels
def _copy_t0_kernel(x_hbm, o_hbm, sem):
    # Unidirectional: mean over a single direction is the identity, so the answer
    # is the t=0 slab of x (the first B*H contiguous elements) -> one DMA.
    cp = pltpu.make_async_copy(x_hbm.at[0], o_hbm, sem)
    cp.start()
    cp.wait()


def _make_split_mean_kernel(num_directions, compute_dtype):
    """Fast bidirectional path: one lane-aligned (tb, H) ref per direction."""
    inv = 1.0 / num_directions

    def kernel(*refs):
        dir_refs, o_ref = refs[:num_directions], refs[num_directions]
        acc = dir_refs[0][...].astype(compute_dtype)
        for r in dir_refs[1:]:
            acc = acc + r[...].astype(compute_dtype)
        o_ref[...] = (acc * inv).astype(o_ref.dtype)

    return kernel


def _make_sliced_mean_kernel(num_directions, hidden, compute_dtype):
    """Fallback (H % 128 != 0): single (tb, D*H) block, slice directions in-kernel."""
    inv = 1.0 / num_directions

    def kernel(x_ref, o_ref):
        acc = x_ref[:, 0:hidden].astype(compute_dtype)
        for d in range(1, num_directions):
            acc = acc + x_ref[:, d * hidden:(d + 1) * hidden].astype(compute_dtype)
        o_ref[...] = (acc * inv).astype(o_ref.dtype)

    return kernel


# ----------------------------------------------------------------------------- helpers
def _sublane_multiple(dtype):
    # Native vreg sublane tile: 8 rows (4-byte), 16 (2-byte), 32 (1-byte dtypes).
    return max(8, 32 // jnp.dtype(dtype).itemsize)


def _vmem_capacity_bytes():
    try:
        return int(pltpu.get_tpu_info().vmem_capacity_bytes)
    except Exception:  # be safe if the query is unavailable in this environment
        return 64 << 20  # conservative (v7x-sized per-core VMEM)


# ----------------------------------------------------------------------------- wrapper
def last_time_step(x_tuple, bidirectional=False, tb=None):
    """Pallas equivalent of LastTimeStep(bidirectional).forward(x_tuple)."""
    x = x_tuple[0]                     # (S, B, D*H); x_tuple[1] (h_n) is unused, as in the module.
    num_directions = 2 if bidirectional else 1
    S, B, DH = x.shape
    assert DH % num_directions == 0
    H = DH // num_directions
    dtype = x.dtype
    itemsize = jnp.dtype(dtype).itemsize
    out_shape = jax.ShapeDtypeStruct((B, H), dtype)

    # ---------------- D == 1: single contiguous HBM->HBM copy of the t=0 slab -------------
    if num_directions == 1:
        return pl.pallas_call(
            _copy_t0_kernel,
            out_shape=out_shape,
            in_specs=[pl.BlockSpec(memory_space=pl.ANY)],
            out_specs=pl.BlockSpec(memory_space=pl.ANY),
            scratch_shapes=[pltpu.SemaphoreType.DMA(())],
        )(x)

    # ---------------- D == 2 (bidirectional): batch-tiled streaming mean -------------------
    vmem_cap = _vmem_capacity_bytes()
    # Usable scoped-VMEM cap: physical minus headroom (~48 MiB on v7x, ~112 MiB on v5e/v6e).
    vmem_cap_usable = max(32 << 20, vmem_cap - (16 << 20))

    align = _sublane_multiple(dtype)
    # bf16 is VPU-native on v6e/v7x (and gets promoted on v5e anyway); everything
    # else accumulates in f32.  A 2-element mean loses negligible accuracy in bf16.
    compute_dtype = jnp.bfloat16 if dtype == jnp.bfloat16 else jnp.float32

    # Per-batch-row pipeline footprint: double-buffered per-direction inputs +
    # double-buffered output, plus accumulator staging in the compute dtype.
    row_pipe_bytes = 2 * (DH + H) * itemsize + H * jnp.dtype(compute_dtype).itemsize

    if tb is None:
        # Bigger tiles on bigger-VMEM parts: ~8 MiB of input per step on 64 MiB
        # VMEM (v7x), ~16 MiB on 128 MiB VMEM (v5e/v6e).
        target_in_bytes = (8 << 20) if vmem_cap <= (64 << 20) else (16 << 20)
        tb = target_in_bytes // max(1, DH * itemsize)
    tb_cap = vmem_cap_usable // row_pipe_bytes          # what actually fits the budget
    tb = max(1, min(int(tb), tb_cap, B))
    if tb < B:
        tb = max(align, (tb // align) * align)          # dtype-aware sublane alignment
        tb = min(tb, B)

    grid = (pl.cdiv(B, tb),)

    need = tb * row_pipe_bytes
    vmem_limit = int(min(vmem_cap_usable, max(32 << 20, (need * 3) // 2)))

    compiler_params = pltpu.CompilerParams(
        # Batch tiles are independent -> shard across TensorCores on megacore parts.
        # (pltpu.CORE_PARALLEL is a possible further knob on v7x; plain "parallel"
        #  is kept here for portability across v5e/v6e/v7x.)
        dimension_semantics=("parallel",),
        vmem_limit_bytes=vmem_limit,
    )

    if H % 128 == 0:
        # Fast path: per-direction BlockSpecs -> each direction arrives lane-aligned
        # in its own VMEM buffer; the add is pure VPU and the output store is unmasked.
        in_specs = [
            pl.BlockSpec((pl.Squeezed(), tb, H), lambda i, d=d: (0, i, d))
            for d in range(num_directions)
        ]
        kernel = _make_split_mean_kernel(num_directions, compute_dtype)
        operands = (x,) * num_directions
    else:
        # Fallback: full-width block (last dim == full DH satisfies tiling rules),
        # slice the directions inside the kernel (correct for any H, slower layout).
        in_specs = [pl.BlockSpec((pl.Squeezed(), tb, DH), lambda i: (0, i, 0))]
        kernel = _make_sliced_mean_kernel(num_directions, H, compute_dtype)
        operands = (x,)

    return pl.pallas_call(
        kernel,
        out_shape=out_shape,
        grid=grid,
        in_specs=in_specs,
        out_specs=pl.BlockSpec((tb, H), lambda i: (i, 0)),
        compiler_params=compiler_params,
    )(*operands)


# ----------------------------------------------------------------------------- reference
def _reference(x, num_directions):
    # Pure-JAX reference mirroring the PyTorch module exactly (f32 accumulation).
    S, B, DH = x.shape
    H = DH // num_directions
    r = x.reshape(S, B, num_directions, H).astype(jnp.float32)
    r = jnp.mean(r, axis=2)
    return r[0].reshape(B, -1)


if __name__ == "__main__":
    key = jax.random.PRNGKey(0)
    ok = True

    # (bidirectional, S, B, H, dtype, tb_override, tol)
    cases = [
        (False, 8, 8, 128, jnp.float32, None, 1e-5),    # D=1: single contiguous DMA copy
        (True, 8, 8, 128, jnp.float32, None, 1e-5),     # D=2: single batch tile, per-direction specs
        (True, 4, 192, 128, jnp.float32, 64, 1e-5),     # D=2: multi-tile batch grid
        (True, 4, 32, 128, jnp.bfloat16, None, 2e-2),   # D=2: bf16 native-VPU path
    ]
    for bidirectional, S, B, H, dtype, tb, tol in cases:
        D = 2 if bidirectional else 1
        key, k1, k2 = jax.random.split(key, 3)
        rnn_out = jax.random.normal(k1, (S, B, D * H), dtype=dtype)
        h_n = jax.random.normal(k2, (D, B, H), dtype=dtype)  # unused, part of the tuple as in PyTorch

        out = last_time_step((rnn_out, h_n), bidirectional=bidirectional, tb=tb)
        out = jax.block_until_ready(out)

        ref = _reference(rnn_out, D)
        good = (out.shape == (B, H)) and bool(
            jnp.allclose(out.astype(jnp.float32), ref, atol=tol, rtol=tol)
        )
        ok = ok and good

    if ok:
        print("KERNEL_OK")
</pallas_src>

<mosaic_0001>
module attributes {stable_mosaic.version = 11 : i64} {
  func.func @_copy_t0_kernel(%arg0: memref<8x8x128xf32, #tpu.memory_space<any>>, %arg1: memref<8x128xf32, #tpu.memory_space<any>>, %arg2: memref<!tpu.dma_semaphore, #tpu.memory_space<semaphore_mem>>) attributes {dimension_semantics = [], scalar_prefetch = 0 : i64, scratch_operands = 1 : i64, tpu.core_type = #tpu.core_type<tc>} {
    %c0_i32 = arith.constant 0 : i32
    %c0_i32_0 = arith.constant 0 : i32
    %c0_i32_1 = arith.constant 0 : i32
    %0 = tpu.memref_slice %arg0[%c0_i32, %c0_i32_0, %c0_i32_1] : memref<8x8x128xf32, #tpu.memory_space<any>> -> memref<1x8x128xf32, #tpu.memory_space<any>>
    %1 = tpu.memref_squeeze %0 : memref<1x8x128xf32, #tpu.memory_space<any>> -> memref<8x128xf32, #tpu.memory_space<any>>
    tpu.enqueue_dma source(%1 : memref<8x128xf32, #tpu.memory_space<any>>) target(%arg1 : memref<8x128xf32, #tpu.memory_space<any>>) target_semaphore(%arg2 : memref<!tpu.dma_semaphore, #tpu.memory_space<semaphore_mem>>)
    %c0_i32_2 = arith.constant 0 : i32
    %c0_i32_3 = arith.constant 0 : i32
    %c0_i32_4 = arith.constant 0 : i32
    %2 = tpu.memref_slice %arg0[%c0_i32_2, %c0_i32_3, %c0_i32_4] : memref<8x8x128xf32, #tpu.memory_space<any>> -> memref<1x8x128xf32, #tpu.memory_space<any>>
    %3 = tpu.memref_squeeze %2 : memref<1x8x128xf32, #tpu.memory_space<any>> -> memref<8x128xf32, #tpu.memory_space<any>>
    tpu.wait_dma2 semaphore(%arg2 : memref<!tpu.dma_semaphore, #tpu.memory_space<semaphore_mem>>) src(%3 : memref<8x128xf32, #tpu.memory_space<any>>) dst(%arg1 : memref<8x128xf32, #tpu.memory_space<any>>)
    return
  }
}

</mosaic_0001>

<bundles_post_ra>
// kernel: tpu_custom_call.1
= control target key start
LH: loop header
LB: loop body
LE: loop exit
PB: predicated region body
PF: predicated region fallthrough
CT: control target
= control target key end

     0   :  { %s32_s12 = smov [#allocation2]   ;;  %s33_s13 = smov [#allocation3]   ;;  %s51_s0 = inlined_call_operand.hbm [shape: f32[8,8,128], index: 0, kind: input, shape index: {}]   ;;  %s52_s1 = inlined_call_operand.hbm [shape: f32[8,128], index: 1, kind: output, shape index: {}]  }
   0x1   :  { %s10_s8 = sshll.u32 %s51_s0, 4  ;;  %s12_s11 = sshll.u32 %s52_s1, 4  ;;  %s11_s8 = int_to_ptr.hbm [resolvable:$true] %s10_s8  ;;  %s13_s11 = int_to_ptr.hbm [resolvable:$true] %s12_s11 }
   0x2   :  { %s34_s14 = smov 0  }
   0x3   :  { %16 = dma.general %s11_s8, 128, %s13_s11, %s32_s12, %s33_s13, [#allocation4], %s34_s14, 0  }
   0x4   :  { %30 = dma.done.wait [#allocation2], 128 }
   0x5   :  { %31 = vsyncadd [#allocation2], 4294967168 }
   0x6   :  { %20 = vsyncmov [#allocation2] }
   0x9   :  { %s21_s15 = vpop.sfrf %20 }
   0xa   :  { %p26_p0 = scmp.ne.s32.totalorder %s21_s15, 0 }
   0xc   :  { %25 = shalt.err (%p26_p0)  }

</bundles_post_ra>
